<compile_context>
chip_gen: v6e
topology: v6e:2x2x1
jax: 0.10.0
libtpu: 0.0.40
codegen_flags: <defaults>
</compile_context>

<pallas_src>
import functools

import jax
import jax.numpy as jnp
from jax.experimental import pallas as pl
from jax.experimental.pallas import tpu as pltpu


def _biasfree_layernorm_kernel(x_ref, w_ref, o_ref, *, eps: float, inv_c: float):
    # x_ref: (C, T) tile — channels on sublanes, spatial positions on lanes.
    x = x_ref[...].astype(jnp.float32)
    # Single-pass population variance over the channel (sublane) axis.
    s1 = jnp.sum(x, axis=0, keepdims=True)            # (1, T)
    s2 = jnp.sum(x * x, axis=0, keepdims=True)        # (1, T)
    mu = s1 * inv_c
    var = s2 * inv_c - mu * mu                        # unbiased=False
    inv = jax.lax.rsqrt(var + eps)                    # (1, T) — EUP slot
    w = w_ref[...]                                    # (C, 1), kept in f32
    # BiasFree: scale the UN-centered x (sigma uses the mean; x is not centered).
    o_ref[...] = (x * (inv * w)).astype(o_ref.dtype)


def _vmem_capacity_bytes():
    """Physical VMEM of the current chip; conservative (v7x) fallback."""
    try:
        info = pltpu.get_tpu_info()
        return int(getattr(info, "vmem_capacity_bytes", 64 << 20))
    except Exception:
        return 64 << 20


def _tile_and_vmem_budget(itemsize):
    """Generation-tuned (input-tile target bytes, vmem_limit_bytes)."""
    cap = _vmem_capacity_bytes()
    if cap >= (96 << 20):          # v5e / v6e: 128 MiB physical VMEM
        vmem_limit = 64 << 20
    else:                          # v7x: 64 MiB physical VMEM
        vmem_limit = 48 << 20
    # Per-tile VMEM cost model: 2x double-buffered input + 2x double-buffered
    # output in the native dtype, plus ~2 full-tile f32 temporaries in-kernel.
    per_tile_factor = 4.0 + 8.0 / float(itemsize)
    target = int(0.8 * vmem_limit / per_tile_factor)
    target = max(1 << 20, min(target, 16 << 20))
    return target, vmem_limit


def _pick_tile_hw(hw, c, itemsize, batch, target_bytes):
    """Lane-tile size: multiple of 128, ~target_bytes per input buffer,
    while keeping enough grid steps for v7x's two TensorCores."""
    if hw <= 128:
        # Small feature map: full extent (single block; stores are masked but
        # there is only one block per batch item — not worth a pad+slice copy).
        return hw
    t = target_bytes // max(1, c * itemsize)
    t = max(128, (t // 128) * 128)
    t = min(t, hw)
    # Keep >= ~4 total grid steps when the problem allows it so both v7x
    # TensorCores get work; never drop below 128-lane tiles.
    min_steps = 4
    if batch * pl.cdiv(hw, t) < min_steps:
        want_blocks = max(1, -(-min_steps // batch))        # ceil(min_steps/batch)
        t_bal = -(-hw // want_blocks)                       # ceil(hw/want_blocks)
        t_bal = max(128, ((t_bal + 127) // 128) * 128)      # round up to 128
        t = min(t, t_bal)
    return t


def biasfree_layernorm_nchw(x_nchw, weight, *, eps=1e-5):
    """Channel LayerNorm of an NCHW tensor == to_4d(BiasFree_LayerNorm(to_3d(x)))."""
    b, c, h, w = x_nchw.shape
    hw = h * w
    x3 = x_nchw.reshape(b, c, hw)                      # free reshape, no transpose
    w2 = weight.reshape(c, 1).astype(jnp.float32)      # keep the weight in f32

    itemsize = jnp.dtype(x3.dtype).itemsize
    tile_target, vmem_limit = _tile_and_vmem_budget(itemsize)
    t_hw = _pick_tile_hw(hw, c, itemsize, b, tile_target)
    n_hw = pl.cdiv(hw, t_hw)

    kernel = functools.partial(
        _biasfree_layernorm_kernel, eps=float(eps), inv_c=1.0 / float(c))

    # Memory-bound op: tell XLA's scheduler so it overlaps neighbors correctly.
    cost = pl.CostEstimate(
        flops=7 * b * c * hw,
        transcendentals=b * hw,
        bytes_accessed=2 * b * c * hw * itemsize + c * 4,
    )

    out3 = pl.pallas_call(
        kernel,
        out_shape=jax.ShapeDtypeStruct((b, c, hw), x3.dtype),
        grid_spec=pltpu.PrefetchScalarGridSpec(
            num_scalar_prefetch=0,
            grid=(b, n_hw),
            in_specs=[
                # batch dim squeezed out; kernel sees (C, T_hw)
                pl.BlockSpec((None, c, t_hw), lambda i, j: (i, 0, j)),
                # weight is constant across the grid -> loaded once
                pl.BlockSpec((c, 1), lambda i, j: (0, 0)),
            ],
            out_specs=pl.BlockSpec((None, c, t_hw), lambda i, j: (i, 0, j)),
        ),
        compiler_params=pltpu.CompilerParams(
            dimension_semantics=("parallel", "parallel"),
            vmem_limit_bytes=vmem_limit,
        ),
        cost_estimate=cost,
    )(x3, w2)

    return out3.reshape(b, c, h, w)


def _reference(x_nchw, weight, eps=1e-5):
    # Pure-JAX reference: to_3d -> BiasFree_LayerNorm -> to_4d
    x = jnp.transpose(x_nchw, (0, 2, 3, 1)).astype(jnp.float32)   # B,H,W,C
    var = jnp.var(x, axis=-1, keepdims=True)                      # population var
    y = x / jnp.sqrt(var + eps) * weight.astype(jnp.float32)
    return jnp.transpose(y, (0, 3, 1, 2)).astype(x_nchw.dtype)


if __name__ == "__main__":
    key = jax.random.PRNGKey(0)
    kx, kw = jax.random.split(key)
    B, C, H, W = 2, 4, 16, 16
    x = jax.random.normal(kx, (B, C, H, W), dtype=jnp.float32)
    # Module init is ones; perturb deterministically so the weight path is tested.
    weight = jnp.ones((C,), jnp.float32) + 0.1 * jax.random.normal(kw, (C,), jnp.float32)

    out = biasfree_layernorm_nchw(x, weight)
    out = jax.block_until_ready(out)
    ref = _reference(x, weight)

    if jnp.allclose(out, ref, atol=1e-4, rtol=1e-4):
        print("KERNEL_OK")
    else:
        print("MISMATCH max_abs_err =", float(jnp.max(jnp.abs(out - ref))))
</pallas_src>

<mosaic_0001>
module attributes {stable_mosaic.version = 11 : i64} {
  func.func @_biasfree_layernorm_kernel(%arg0: i32, %arg1: i32, %arg2: memref<1x4x128xf32, #tpu.memory_space<vmem>>, %arg3: memref<4x1xf32, #tpu.memory_space<vmem>>, %arg4: memref<1x4x128xf32, #tpu.memory_space<vmem>>) attributes {dimension_semantics = [#tpu.dimension_semantics<parallel>, #tpu.dimension_semantics<parallel>], iteration_bounds = array<i64: 2, 2>, scalar_prefetch = 0 : i64, scratch_operands = 0 : i64, tpu.core_type = #tpu.core_type<tc>, window_params = [{transform_indices = @transform_0, window_bounds = array<i64: 1, 4, 128>}, {pipeline_mode = #tpu.pipeline_mode<synchronous>, transform_indices = @transform_1, window_bounds = array<i64: 4, 1>}, {transform_indices = @transform_2, window_bounds = array<i64: 1, 4, 128>}]} {
    %c0 = arith.constant 0 : index
    %c0_0 = arith.constant 0 : index
    %c0_1 = arith.constant 0 : index
    %0 = vector.load %arg2[%c0, %c0_0, %c0_1] : memref<1x4x128xf32, #tpu.memory_space<vmem>>, vector<1x4x128xf32>
    %1 = vector.shape_cast %0 : vector<1x4x128xf32> to vector<4x128xf32>
    %cst = arith.constant dense<0.000000e+00> : vector<128xf32>
    %2 = vector.multi_reduction <add>, %1, %cst [0] : vector<4x128xf32> to vector<128xf32>
    %3 = vector.shape_cast %2 : vector<128xf32> to vector<1x128xf32>
    %4 = arith.mulf %1, %1 : vector<4x128xf32>
    %cst_2 = arith.constant dense<0.000000e+00> : vector<128xf32>
    %5 = vector.multi_reduction <add>, %4, %cst_2 [0] : vector<4x128xf32> to vector<128xf32>
    %6 = vector.shape_cast %5 : vector<128xf32> to vector<1x128xf32>
    %cst_3 = arith.constant 2.500000e-01 : f32
    %7 = vector.broadcast %cst_3 : f32 to vector<1x128xf32>
    %8 = arith.mulf %3, %7 : vector<1x128xf32>
    %cst_4 = arith.constant 2.500000e-01 : f32
    %9 = vector.broadcast %cst_4 : f32 to vector<1x128xf32>
    %10 = arith.mulf %6, %9 : vector<1x128xf32>
    %11 = arith.mulf %8, %8 : vector<1x128xf32>
    %12 = arith.subf %10, %11 : vector<1x128xf32>
    %cst_5 = arith.constant 9.99999974E-6 : f32
    %13 = vector.broadcast %cst_5 : f32 to vector<1x128xf32>
    %14 = arith.addf %12, %13 : vector<1x128xf32>
    %15 = math.rsqrt %14 : vector<1x128xf32>
    %c0_6 = arith.constant 0 : index
    %c0_7 = arith.constant 0 : index
    %16 = vector.load %arg3[%c0_6, %c0_7] : memref<4x1xf32, #tpu.memory_space<vmem>>, vector<4x1xf32>
    %17 = vector.broadcast %15 : vector<1x128xf32> to vector<4x128xf32>
    %18 = vector.broadcast %16 : vector<4x1xf32> to vector<4x128xf32>
    %19 = arith.mulf %17, %18 : vector<4x128xf32>
    %20 = arith.mulf %1, %19 : vector<4x128xf32>
    %c0_8 = arith.constant 0 : index
    %c0_9 = arith.constant 0 : index
    %c0_10 = arith.constant 0 : index
    %21 = vector.load %arg4[%c0_8, %c0_9, %c0_10] : memref<1x4x128xf32, #tpu.memory_space<vmem>>, vector<1x4x128xf32>
    %22 = vector.shape_cast %21 : vector<1x4x128xf32> to vector<4x128xf32>
    %23 = vector.shape_cast %20 : vector<4x128xf32> to vector<1x4x128xf32>
    tpu.vector_store %arg4[%c0_8, %c0_9, %c0_10], %23 {strides = array<i32>} : memref<1x4x128xf32, #tpu.memory_space<vmem>>, vector<1x4x128xf32>,
    return
  }
  func.func @transform_0(%arg0: i32, %arg1: i32) -> (i32, i32, i32) {
    %c0_i32 = arith.constant 0 : i32
    %c0_i32_0 = arith.constant 0 : i32
    return %arg0, %c0_i32, %arg1 : i32, i32, i32
  }
  func.func @transform_1(%arg0: i32, %arg1: i32) -> (i32, i32) {
    %c0_i32 = arith.constant 0 : i32
    %c0_i32_0 = arith.constant 0 : i32
    %c0_i32_1 = arith.constant 0 : i32
    return %c0_i32, %c0_i32_0 : i32, i32
  }
  func.func @transform_2(%arg0: i32, %arg1: i32) -> (i32, i32, i32) {
    %c0_i32 = arith.constant 0 : i32
    %c0_i32_0 = arith.constant 0 : i32
    return %arg0, %c0_i32, %arg1 : i32, i32, i32
  }
}

</mosaic_0001>

<bundles_post_ra>
// kernel: tpu_custom_call.1
= control target key start
LH: loop header
LB: loop body
LE: loop exit
PB: predicated region body
PF: predicated region fallthrough
CT: control target
= control target key end

     0   :  { %7 = vsyncpa [#allocation3], 0  ;;  %s714_s0 = inlined_call_operand.hbm [shape: f32[2,4,256], index: 0, kind: input, shape index: {}]   ;;  %s715_s1 = inlined_call_operand.vmem [shape: f32[4,1], index: 1, kind: input, shape index: {}]   ;;  %s716_s2 = inlined_call_operand.hbm [shape: f32[2,4,256], index: 2, kind: output, shape index: {}]  }
   0x1   :  { %9 = vsyncpa [#allocation3 + $0x1], 0 }
   0x2   :  { %10 = vsyncpa [#allocation4], 0 }
   0x3   :  { %12 = vsyncpa [#allocation4 + $0x1], 0  ;;  %s551_s9 = smov 0   ;;  %s553_s10 = smov 0  }
   0x4   :  { %s555_s11 = smov 0   ;;  %s557_s12 = smov 0  }
   0x5   :  { %s559_s13 = smov 0   ;;  %s561_s14 = smov 0  }
   0x6   :  { %s563_s15 = smov 0   ;;  %s565_s16 = smov 0  }
   0x7 LB: > { %s310_s17 = sadd.s32 4294967295, %s531_s16   ;;  %s311_s18 = sadd.s32 4294967294, %s531_s16   ;;  %s531_s16 = sphi %s565_s16, %s18_s16   ;;  %s527_s15 = sphi %s563_s15, %s729_s15   ;;  %s523_s14 = sphi %s561_s14, %s728_s14   ;;  %s519_s13 = sphi %s559_s13, %s727_s13   ;;  %s515_s12 = sphi %s557_s12, %s726_s12   ;;  %s511_s11 = sphi %s555_s11, %s725_s11   ;;  %s507_s10 = sphi %s553_s10, %s724_s10   ;;  %s503_s9 = sphi %s551_s9, %s723_s9  }
   0x8   : > { %s27_s19 = sadd.s32 1, %s523_s14  ;;  %s30_s20 = sadd.s32 1, %s527_s15 }
   0x9   : > { %p28_p0 = scmp.ge.s32.totalorder %s27_s19, 2  ;;  %s39_s21 = sadd.s32 1, %s511_s11 }
   0xa   : > { %p46_p1 = scmp.ne.s32.totalorder %s511_s11, %s507_s10  ;;  %p47_p2 = scmp.eq.s32.totalorder %s531_s16, 0 }
   0xb   : > { %s731_s19 = smov (%p28_p0, %s27_s19), 0  ;;  %s733_s20 = smov (!%p28_p0, %s30_s20), %s527_s15 }
   0xc   : > { %s35_s22 = ssub.s32 %s523_s14, %s731_s19  ;;  %p604_p3 = por %p47_p2, %p46_p1 }
   0xd   : > { %p32_p4 = scmp.ge.s32.totalorder %s733_s20, 2  ;;  %p52_p5 = scmp.ne.s32.totalorder %s507_s10, %s503_s9 }
   0xe   : > { %p53_p6 = scmp.eq.s32.totalorder %s310_s17, 0  ;;  %p99_p7 = scmp.eq.s32.totalorder %s310_s17, 3 }
   0xf   : > { %s735_s20 = smov (%p32_p4, %s733_s20), 0  ;;  %p105_p10 = scmp.eq.s32.totalorder %s311_s18, 3 }
  0x10   : > { %p612_p8 = por %p53_p6, %p52_p5  ;;  %p616_p9 = por %p99_p7, %p46_p1 }
  0x11   : > { %s34_s26 = ssub.s32 %s527_s15, %s735_s20  ;;  %p622_p12 = por %p105_p10, %p52_p5 }
  0x12   : > { %s36_s27 = sor.u32 %s35_s22, %s34_s26  ;;  %p337_p13 = scmp.lt.s32.totalorder %s531_s16, 4 }
  0x13   : > { %p37_p11 = scmp.eq.s32.totalorder %s36_s27, 0  ;;  %s128_s29 = sand.u32 1, %s511_s11  }
  0x14   : > { %s720_s28 = scalar_select %p622_p12, 1, 0 }
  0x15   : > { %s629_s30 = scalar_select %p37_p11, %s511_s11, %s39_s21  }
  0x16   : > { %s314_s3 = sshll.u32 %s128_s29, 2  ;;  %s315_s4 = sshll.u32 %s527_s15, 1 }
  0x17   : > { %s137_s5 = sadd.s32 %s523_s14, %s315_s4  ;;  %s132_s6 = scalar_lea.vmem [#allocation2], %s314_s3 }
  0x18   : > { %s141_s7 = sshll.u32 %s132_s6, 4  ;;  %s316_s8 = sshll.u32 %s137_s5, 6  ;;  %s142_s7 = int_to_ptr.vmem [resolvable:$true] %s141_s7 }
  0x19   : > { %s139_s22 = scalar_lea.hbm %s714_s0, %s316_s8  ;;  %p638_p0 = pnand %p337_p13, %p604_p3 }
  0x1a   : > { %p317_p1 = scmp.ge.s32.totalorder %s531_s16, 1  ;;  %p146_p2 = scmp.lt.s32.totalorder %s531_s16, 5 }
  0x1b   : > { %s129_s21 = scalar_lea.sflag [#allocation3], %s128_s29  ;;  %p409_p4 = pneg %p638_p0 }
  0x1c   : > { %s420_s27 = scalar_lea.vmem %s142_s7, 64  ;;  %s533_s3 = smov [#allocation2]  }
  0x1d   : > { %p421_p5 = scmp.ne.s32.totalorder %s142_s7, %s420_s27  ;;  %s425_s4 = sshll.u32 %s533_s3, 4  ;;  %s426_s4 = int_to_ptr.vmem [resolvable:$false] %s425_s4 }
  0x1e   : > { %s427_s5 = scalar_lea.vmem %s426_s4, 128  ;;  %p428_p10 = scmp.lt.s32.totalorder %s142_s7, %s426_s4 }
  0x1f   : > { %p423_p6 = pnand %p421_p5, %p409_p4  ;;  %p429_p11 = scmp.lt.s32.totalorder %s427_s5, %s420_s27 }
  0x21   : > { %p424_p7 = pneg %p423_p6  ;;  %p430_p3 = por %p429_p11, %p428_p10 }
  0x23   : > { %p431_p13 = pnand %p430_p3, %p424_p7 }
  0x25   : > { %434 = shalt.err (!%p431_p13)
}
  0x26   : > { %332 = dma.hbm_to_vmem [thread:$0]  (!%p638_p0), %s139_s22, 64, %s142_s7, %s129_s21  }
  0x27   : > { %p147_p12 = pnand %p317_p1, %p146_p2 }
  0x28   : > { %s653_s23 = sand.u32 (!%p147_p12), 1, %s507_s10  }
  0x29   : > { %150 = sbr.rel (%p147_p12) target bundleno = 190 (0xbe), region = 28  ;;  %s318_s29 = sshll.u32 (!%p147_p12), %s653_s23, 2 }
  0x2a   : > { %s153_s6 = scalar_lea.sflag (!%p147_p12), [#allocation3], %s653_s23  ;;  %s156_s8 = scalar_lea.vmem (!%p147_p12), [#allocation2], %s318_s29 }
  0x2e   : > { %494 = dma.done.wait (%p612_p8), %s153_s6, 64  }
  0x2f   : > { %496 = vsyncadd (%p612_p8), %s153_s6, 4294967232  ;;  %v534_v0 = vmov 0   ;;  %v200_v1 = vld [vmem:[%s715_s1] sm:$0xf]  ;;  %vm178_vm0 = vcmask 1043456   ;;  %s321_s24 = sshll.u32 %s519_s13, 1 }
  0x30   : > { %404 = vset.pattern.permute.xlu0 %v534_v0  ;;  %v177_v2 = vld [vmem:[%s156_s8] sm:$0xf]  ;;  %s221_s18 = sadd.s32 %s515_s12, %s321_s24  ;;  %s176_s26 = scalar_lea.vmem [#allocation5], %s318_s29 }
  0x31   : > { %203 = vperm.xlu0 %404, %v200_v1   ;;  %v179_v3 = vsel %vm178_vm0, %v177_v2, 0.0  ;;  %v186_v4 = vmul.f32 %v177_v2, %v177_v2  ;;  %s322_s22 = sshll.u32 %s221_s18, 6  ;;  %s225_s21 = sshll.u32 %s176_s26, 4  ;;  %s226_s21 = int_to_ptr.vmem [resolvable:$true] %s225_s21 }
  0x32   : > { %v180_v5 = vrot.slane %v179_v3, 4  ;;  %s223_s4 = scalar_lea.hbm %s716_s2, %s322_s22  ;;  %s210_s5 = scalar_lea.sflag [#allocation4], %s653_s23 }
  0x33   : > { %v187_v6 = vsel %vm178_vm0, %v186_v4, 0.0  ;;  %s435_s6 = scalar_lea.vmem %s226_s21, 64  ;;  %s535_s12 = smov [#allocation5]  }
  0x34   : > { %v181_v7 = vadd.f32 %v180_v5, %v179_v3  ;;  %v188_v8 = vrot.slane %v187_v6, 4  ;;  %p436_p8 = scmp.ne.s32.totalorder %s226_s21, %s435_s6  ;;  %s439_s13 = sshll.u32 %s535_s12, 4  ;;  %s440_s13 = int_to_ptr.vmem [resolvable:$false] %s439_s13 }
  0x35   : > { %s441_s8 = scalar_lea.vmem %s440_s13, 128  ;;  %p442_p1 = scmp.lt.s32.totalorder %s226_s21, %s440_s13 }
  0x36   : > { %v182_v9 = vrot.slane %v181_v7, 2  ;;  %v189_v10 = vadd.f32 %v188_v8, %v187_v6  ;;  %p437_p12 = pnand %p436_p8, %p616_p9  ;;  %p443_p2 = scmp.lt.s32.totalorder %s441_s8, %s435_s6 }
  0x38   : > { %v183_v11 = vadd.f32 %v182_v9, %v181_v7  ;;  %v190_v12 = vrot.slane %v189_v10, 2  ;;  %p438_p0 = pneg %p437_p12  ;;  %p444_p4 = por %p443_p2, %p442_p1 }
  0x3a   : > { %v184_v13 = vrot.slane %v183_v11, 1  ;;  %v191_v14 = vadd.f32 %v190_v12, %v189_v10  ;;  %p445_p5 = pnand %p444_p4, %p438_p0 }
  0x3c   : > { %v185_v15 = vadd.f32 %v184_v13, %v183_v11  ;;  %v192_v16 = vrot.slane %v191_v14, 1 }
  0x3e   : > { %v193_v17 = vadd.f32 %v192_v16, %v191_v14  ;;  %v194_v18 = vmul.f32 0.25, %v185_v15 }
  0x40   : > { %v195_v19 = vmul.f32 0.25, %v193_v17  ;;  %v196_v20 = vmul.f32 %v194_v18, %v194_v18 }
  0x42   : > { %v197_v21 = vsub.f32 %v195_v19, %v196_v20 }
  0x44   : > { %v198_v22 = vadd.f32 1e-05, %v197_v21 }
  0x46   : > { %405 = vrsqrt.f32 %v198_v22 }
  0x53   : > { %v406_v23 = vpop.eup %405 }
  0xac   : > { %v204_v24 = vpop.permute.xlu0 %203 }
  0xad   : > { %v206_v25 = vmul.f32 %v406_v23, %v204_v24 }
  0xaf   : > { %v207_v26 = vmul.f32 %v206_v25, %v177_v2 }
  0xb1   : > { %208 = vst [vmem:[%s176_s26] sm:$0xf] %v207_v26 }
  0xb2   : > { %448 = shalt.err (!%p445_p5)
}
  0xb3   : > { %s449_s29 = scalar_lea.hbm %s223_s4, 64  ;;  %s453_s17 = scalar_lea.hbm %s716_s2, 256 }
  0xb4   : > { %p450_p6 = scmp.ne.s32.totalorder %s223_s4, %s449_s29  ;;  %p454_p11 = scmp.lt.s32.totalorder %s223_s4, %s716_s2 }
  0xb5   : > { %p455_p3 = scmp.lt.s32.totalorder %s453_s17, %s449_s29 }
  0xb6   : > { %p451_p7 = pnand %p450_p6, %p616_p9 }
  0xb7   : > { %p456_p13 = por %p455_p3, %p454_p11 }
  0xb8   : > { %p452_p10 = pneg %p451_p7 }
  0xba   : > { %p457_p8 = pnand %p456_p13, %p452_p10 }
  0xbc   : > { %460 = shalt.err (!%p457_p8)
}
  0xbd   : > { %327 = dma.vmem_to_hbm [thread:$0]  (%p616_p9), %s226_s21, 64, %s223_s4, %s210_s5  }
  0xbe PF: > { %p338_p12 = scmp.ge.s32.totalorder %s531_s16, 2  ;;  %s237_s22 = sand.u32 1, %s503_s9  }
  0xbf   : > { %p722_p0 = scmp.ne.s32.totalorder %s720_s28, 0  ;;  %s238_s26 = scalar_lea.sflag [#allocation4], %s237_s22 }
  0xc1   : > { %p334_p1 = pnand %p338_p12, %p722_p0 }
  0xc3   : > { %p335_p2 = pneg %p334_p1 }
  0xc5   : > { %498 = dma.done.wait (%p335_p2), %s238_s26, 64  }
  0xc6   : > { %500 = vsyncadd (%p335_p2), %s238_s26, 4294967232  ;;  %s18_s16 = sadd.s32 1, %s531_s16   ;;  %s723_s9 = smov %s507_s10 }
  0xc7   : > { %p15_p4 = scmp.ge.s32.totalorder %s18_s16, 6   ;;  %s724_s10 = smov %s511_s11 }
  0xc8   : > { %s725_s11 = smov %s629_s30  ;;  %s726_s12 = smov %s523_s14 }
  0xc9   : > { %s727_s13 = smov %s527_s15  ;;  %s728_s14 = smov %s731_s19 }
  0xca   : > { %s729_s15 = smov %s735_s20  ;;  %17 = sbr.rel (!%p15_p4) target bundleno = 7 (0x7), region = 73 }
  0xcf   :  { %243 = vsyncpa [#allocation3], 1 }
  0xd0   :  { %245 = vsyncpa [#allocation3 + $0x1], 1 }
  0xd1   :  { %246 = vsyncpa [#allocation4], 1 }
  0xd2   :  { %248 = vsyncpa [#allocation4 + $0x1], 1 }

</bundles_post_ra>
